<compile_context>
chip_gen: v7x
topology: tpu7x:2x2x1
jax: 0.10.0
libtpu: 0.0.40
codegen_flags: <defaults>
</compile_context>

<pallas_src>
import functools

import numpy as np
import jax
import jax.numpy as jnp
from jax import lax
from jax.experimental import pallas as pl
from jax.experimental.pallas import tpu as pltpu


def _round_up(v, m):
    return ((v + m - 1) // m) * m


def _pick_tile_n(n, c, x_itemsize, vmem_tile_budget_bytes=28 * 1024 * 1024):
    """Pick a batch tile size that fits VMEM on all generations (incl. v7x 64 MiB).

    Per tile row we budget: 2x double-buffered native-dtype input row plus ~4
    f32-sized intermediates (logits, exp(logits-m), col_ids, select/mask temps).
    """
    bytes_per_row = c * (2 * x_itemsize + 4 * 4) + 16
    tile_n = vmem_tile_budget_bytes // max(bytes_per_row, 1)
    tile_n = int(min(tile_n, 1024, _round_up(n, 8)))
    tile_n = max(8, (tile_n // 8) * 8)
    return tile_n


def _la_loss_kernel(x_ref, iota_ref, tgt_ref, out_ref, acc_ref, *,
                    n_true, tile_n, num_classes, inv_n):
    # x_ref:    (TILE_N, C) native dtype (f32 / bf16) logits tile
    # iota_ref: (1, C)      f32 logit adjustment (resident, broadcast over batch)
    # tgt_ref:  (TILE_N, 1) i32 class labels tile
    # out_ref:  (1, 1)      f32 mean cross-entropy loss
    # acc_ref:  (1, 1)      f32 running sum of per-sample losses (VMEM scratch)
    i = pl.program_id(0)

    @pl.when(i == 0)
    def _init():
        acc_ref[...] = jnp.zeros_like(acc_ref)

    # Upcast in-register (cheap VPU op); keeps HBM traffic at native dtype width.
    logits = x_ref[...].astype(jnp.float32) + iota_ref[...]          # (TILE_N, C)

    # Numerically-stable log-sum-exp per row (exp/log go to the EUP slot).
    m = jnp.max(logits, axis=-1, keepdims=True)                      # (TILE_N, 1)
    lse = m + jnp.log(jnp.sum(jnp.exp(logits - m), axis=-1, keepdims=True))

    # Gather logit at target class via one-hot mask (no dynamic gather on TPU).
    col_ids = lax.broadcasted_iota(jnp.int32, (tile_n, num_classes), 1)
    tgt = tgt_ref[...]                                               # (TILE_N, 1)
    sel = jnp.sum(jnp.where(col_ids == tgt, logits, 0.0),
                  axis=-1, keepdims=True)                            # (TILE_N, 1)

    # Mask out the ragged last block's padded rows (undefined values) so they
    # contribute nothing; jnp.where blocks NaN/Inf from the unselected branch.
    row_ids = i * tile_n + lax.broadcasted_iota(jnp.int32, (tile_n, 1), 0)
    valid = row_ids < n_true
    per_sample = jnp.where(valid, lse - sel, 0.0)                    # (TILE_N, 1)

    acc_ref[...] += jnp.sum(per_sample, axis=(0, 1), keepdims=True)

    @pl.when(i == pl.num_programs(0) - 1)
    def _finalize():
        # Multiply by compile-time 1/N (true batch size, not padded size).
        out_ref[...] = acc_ref[...] * jnp.float32(inv_n)


def la_loss(x, iota, target, *, tile_n=None, vmem_limit_bytes=48 * 1024 * 1024):
    """x: (N, C) f32/bf16, iota: (C,) f32, target: (N,) int -> scalar f32 mean loss."""
    n, c = x.shape
    if tile_n is None:
        tile_n = _pick_tile_n(n, c, jnp.dtype(x.dtype).itemsize)
    tile_n = max(8, (int(tile_n) // 8) * 8)

    num_tiles = pl.cdiv(n, tile_n)

    iota2d = iota.reshape(1, c).astype(jnp.float32)
    tgt2d = target.reshape(n, 1).astype(jnp.int32)

    kernel = functools.partial(
        _la_loss_kernel,
        n_true=n, tile_n=tile_n, num_classes=c, inv_n=1.0 / n)

    out = pl.pallas_call(
        kernel,
        out_shape=jax.ShapeDtypeStruct((1, 1), jnp.float32),
        grid_spec=pltpu.PrefetchScalarGridSpec(
            num_scalar_prefetch=0,
            grid=(num_tiles,),
            in_specs=[
                pl.BlockSpec((tile_n, c), lambda i: (i, 0)),   # x: streamed per tile
                pl.BlockSpec((1, c), lambda i: (0, 0)),        # iota: resident block
                pl.BlockSpec((tile_n, 1), lambda i: (i, 0)),   # target: streamed
            ],
            out_specs=pl.BlockSpec((1, 1), lambda i: (0, 0)),
            scratch_shapes=[pltpu.VMEM((1, 1), jnp.float32)],
        ),
        compiler_params=pltpu.CompilerParams(
            dimension_semantics=("arbitrary",),   # accumulator across batch tiles
            vmem_limit_bytes=vmem_limit_bytes,
        ),
    )(x, iota2d, tgt2d)
    return out[0, 0]


def make_iota_list(cls_num_list, tau=1.0):
    cls_num_list = np.asarray(cls_num_list, dtype=np.float64)
    cls_probs = cls_num_list / cls_num_list.sum()
    return jnp.asarray(tau * np.log(cls_probs), dtype=jnp.float32)


def _reference(x, iota, target):
    # pure-JAX reference of F.cross_entropy(x + iota, target)
    logits = x.astype(jnp.float32) + iota[None, :].astype(jnp.float32)
    lse = jax.nn.logsumexp(logits, axis=-1)
    sel = jnp.take_along_axis(logits, target[:, None], axis=-1)[:, 0]
    return jnp.mean(lse - sel)


if __name__ == "__main__":
    key = jax.random.PRNGKey(0)

    # --- test 1: small deterministic setup (batch=8, 16 classes), f32 ---
    N, C = 8, 16
    cls_num_list = [100, 80, 60, 50, 40, 30, 25, 20, 15, 12, 10, 8, 6, 4, 2, 1]
    iota = make_iota_list(cls_num_list, tau=1.0)

    kx, kt, kx2, kt2 = jax.random.split(key, 4)
    x = jax.random.normal(kx, (N, C), dtype=jnp.float32)
    target = jax.random.randint(kt, (N,), 0, C, dtype=jnp.int32)

    loss = la_loss(x, iota, target)
    jax.block_until_ready(loss)
    ref = _reference(x, iota, target)
    assert jnp.allclose(loss, ref, atol=1e-5, rtol=1e-5), (loss, ref)

    # --- test 2: non-multiple batch + bf16 input + explicit tiling (masked ragged
    #             last block, no wrapper-side padding) ---
    N2, C2 = 300, 256
    cls_num_list2 = list(range(C2, 0, -1))
    iota2 = make_iota_list(cls_num_list2, tau=1.0)
    x2 = jax.random.normal(kx2, (N2, C2), dtype=jnp.float32).astype(jnp.bfloat16)
    target2 = jax.random.randint(kt2, (N2,), 0, C2, dtype=jnp.int32)

    loss2 = la_loss(x2, iota2, target2, tile_n=64)
    jax.block_until_ready(loss2)
    ref2 = _reference(x2, iota2, target2)
    assert jnp.allclose(loss2, ref2, atol=1e-4, rtol=1e-4), (loss2, ref2)

    print("KERNEL_OK")
</pallas_src>

<mosaic_0001>
module attributes {stable_mosaic.version = 11 : i64} {
  func.func @_la_loss_kernel(%arg0: i32, %arg1: memref<8x16xf32, #tpu.memory_space<vmem>>, %arg2: memref<1x16xf32, #tpu.memory_space<vmem>>, %arg3: memref<8x1xi32, #tpu.memory_space<vmem>>, %arg4: memref<1x1xf32, #tpu.memory_space<vmem>>, %arg5: memref<1x1xf32, #tpu.memory_space<vmem>>) attributes {dimension_semantics = [#tpu.dimension_semantics<arbitrary>], iteration_bounds = array<i64: 1>, scalar_prefetch = 0 : i64, scratch_operands = 1 : i64, tpu.core_type = #tpu.core_type<tc>, window_params = [{transform_indices = @transform_0, window_bounds = array<i64: 8, 16>}, {pipeline_mode = #tpu.pipeline_mode<synchronous>, transform_indices = @transform_1, window_bounds = array<i64: 1, 16>}, {transform_indices = @transform_2, window_bounds = array<i64: 8, 1>}, {pipeline_mode = #tpu.pipeline_mode<synchronous>, transform_indices = @transform_3, window_bounds = array<i64: 1, 1>}]} {
    %c0_i32 = arith.constant 0 : i32
    %0 = arith.cmpi eq, %arg0, %c0_i32 : i32
    %1 = arith.extui %0 : i1 to i32
    %c0_i32_0 = arith.constant 0 : i32
    %2 = arith.cmpi ne, %1, %c0_i32_0 : i32
    scf.if %2 {
      %cst_18 = arith.constant 0.000000e+00 : f32
      %44 = vector.broadcast %cst_18 : f32 to vector<1x1xf32>
      %c0_19 = arith.constant 0 : index
      %c0_20 = arith.constant 0 : index
      %45 = vector.load %arg5[%c0_19, %c0_20] : memref<1x1xf32, #tpu.memory_space<vmem>>, vector<1x1xf32>
      tpu.vector_store %arg5[%c0_19, %c0_20], %44 {strides = array<i32>} : memref<1x1xf32, #tpu.memory_space<vmem>>, vector<1x1xf32>,
    } else {
    }
    %c0 = arith.constant 0 : index
    %c0_1 = arith.constant 0 : index
    %3 = vector.load %arg1[%c0, %c0_1] : memref<8x16xf32, #tpu.memory_space<vmem>>, vector<8x16xf32>
    %c0_2 = arith.constant 0 : index
    %c0_3 = arith.constant 0 : index
    %4 = vector.load %arg2[%c0_2, %c0_3] : memref<1x16xf32, #tpu.memory_space<vmem>>, vector<1x16xf32>
    %5 = vector.broadcast %4 : vector<1x16xf32> to vector<8x16xf32>
    %6 = arith.addf %3, %5 : vector<8x16xf32>
    %cst = arith.constant dense<0xFF800000> : vector<8xf32>
    %7 = vector.multi_reduction <maximumf>, %6, %cst [1] : vector<8x16xf32> to vector<8xf32>
    %8 = vector.shape_cast %7 : vector<8xf32> to vector<8x1xf32>
    %9 = vector.broadcast %8 : vector<8x1xf32> to vector<8x16xf32>
    %10 = arith.subf %6, %9 : vector<8x16xf32>
    %11 = math.exp %10 : vector<8x16xf32>
    %cst_4 = arith.constant dense<0.000000e+00> : vector<8xf32>
    %12 = vector.multi_reduction <add>, %11, %cst_4 [1] : vector<8x16xf32> to vector<8xf32>
    %13 = vector.shape_cast %12 : vector<8xf32> to vector<8x1xf32>
    %14 = math.log %13 : vector<8x1xf32>
    %15 = arith.addf %8, %14 : vector<8x1xf32>
    %16 = tpu.iota {dimensions = array<i32: 1>} : vector<8x16xi32>
    %c0_5 = arith.constant 0 : index
    %c0_6 = arith.constant 0 : index
    %17 = vector.load %arg3[%c0_5, %c0_6] : memref<8x1xi32, #tpu.memory_space<vmem>>, vector<8x1xi32>
    %18 = vector.broadcast %17 : vector<8x1xi32> to vector<8x16xi32>
    %19 = arith.cmpi eq, %16, %18 : vector<8x16xi32>
    %cst_7 = arith.constant 0.000000e+00 : f32
    %20 = vector.broadcast %cst_7 : f32 to vector<8x16xf32>
    %21 = arith.select %19, %6, %20 : vector<8x16xi1>, vector<8x16xf32>
    %cst_8 = arith.constant dense<0.000000e+00> : vector<8xf32>
    %22 = vector.multi_reduction <add>, %21, %cst_8 [1] : vector<8x16xf32> to vector<8xf32>
    %23 = vector.shape_cast %22 : vector<8xf32> to vector<8x1xf32>
    %c8_i32 = arith.constant 8 : i32
    %24 = arith.muli %arg0, %c8_i32 : i32
    %25 = tpu.iota {dimensions = array<i32: 0>} : vector<8x1xi32>
    %26 = vector.broadcast %24 : i32 to vector<8x1xi32>
    %27 = arith.addi %26, %25 : vector<8x1xi32>
    %c8_i32_9 = arith.constant 8 : i32
    %28 = vector.broadcast %c8_i32_9 : i32 to vector<8x1xi32>
    %29 = arith.cmpi slt, %27, %28 : vector<8x1xi32>
    %30 = arith.subf %15, %23 : vector<8x1xf32>
    %cst_10 = arith.constant 0.000000e+00 : f32
    %31 = vector.broadcast %cst_10 : f32 to vector<8x1xf32>
    %32 = arith.select %29, %30, %31 : vector<8x1xi1>, vector<8x1xf32>
    %c0_11 = arith.constant 0 : index
    %c0_12 = arith.constant 0 : index
    %33 = vector.load %arg5[%c0_11, %c0_12] : memref<1x1xf32, #tpu.memory_space<vmem>>, vector<1x1xf32>
    %34 = vector.shape_cast %32 : vector<8x1xf32> to vector<1x8x1xf32>
    %cst_13 = arith.constant dense<0.000000e+00> : vector<1xf32>
    %35 = vector.multi_reduction <add>, %34, %cst_13 [1, 2] : vector<1x8x1xf32> to vector<1xf32>
    %36 = vector.shape_cast %35 : vector<1xf32> to vector<1x1x1xf32>
    %37 = vector.extract %36[0, 0, 0] : f32 from vector<1x1x1xf32>
    %38 = vector.broadcast %37 : f32 to vector<1x1xf32>
    %39 = arith.addf %33, %38 : vector<1x1xf32>
    %c0_14 = arith.constant 0 : index
    %c0_15 = arith.constant 0 : index
    %40 = vector.load %arg5[%c0_14, %c0_15] : memref<1x1xf32, #tpu.memory_space<vmem>>, vector<1x1xf32>
    tpu.vector_store %arg5[%c0_14, %c0_15], %39 {strides = array<i32>} : memref<1x1xf32, #tpu.memory_space<vmem>>, vector<1x1xf32>,
    %c0_i32_16 = arith.constant 0 : i32
    %41 = arith.cmpi eq, %arg0, %c0_i32_16 : i32
    %42 = arith.extui %41 : i1 to i32
    %c0_i32_17 = arith.constant 0 : i32
    %43 = arith.cmpi ne, %42, %c0_i32_17 : i32
    scf.if %43 {
      %c0_18 = arith.constant 0 : index
      %c0_19 = arith.constant 0 : index
      %44 = vector.load %arg5[%c0_18, %c0_19] : memref<1x1xf32, #tpu.memory_space<vmem>>, vector<1x1xf32>
      %cst_20 = arith.constant 1.250000e-01 : f32
      %45 = vector.broadcast %cst_20 : f32 to vector<1x1xf32>
      %46 = arith.mulf %44, %45 : vector<1x1xf32>
      %c0_21 = arith.constant 0 : index
      %c0_22 = arith.constant 0 : index
      %47 = vector.load %arg4[%c0_21, %c0_22] : memref<1x1xf32, #tpu.memory_space<vmem>>, vector<1x1xf32>
      tpu.vector_store %arg4[%c0_21, %c0_22], %46 {strides = array<i32>} : memref<1x1xf32, #tpu.memory_space<vmem>>, vector<1x1xf32>,
    } else {
    }
    return
  }
  func.func @transform_0(%arg0: i32) -> (i32, i32) {
    %c0_i32 = arith.constant 0 : i32
    %c0_i32_0 = arith.constant 0 : i32
    return %arg0, %c0_i32 : i32, i32
  }
  func.func @transform_1(%arg0: i32) -> (i32, i32) {
    %c0_i32 = arith.constant 0 : i32
    %c0_i32_0 = arith.constant 0 : i32
    %c0_i32_1 = arith.constant 0 : i32
    return %c0_i32, %c0_i32_0 : i32, i32
  }
  func.func @transform_2(%arg0: i32) -> (i32, i32) {
    %c0_i32 = arith.constant 0 : i32
    %c0_i32_0 = arith.constant 0 : i32
    return %arg0, %c0_i32 : i32, i32
  }
  func.func @transform_3(%arg0: i32) -> (i32, i32) {
    %c0_i32 = arith.constant 0 : i32
    %c0_i32_0 = arith.constant 0 : i32
    %c0_i32_1 = arith.constant 0 : i32
    return %c0_i32, %c0_i32_0 : i32, i32
  }
}

</mosaic_0001>

<bundles_post_ra>
// kernel: tpu_custom_call.1
= control target key start
LH: loop header
LB: loop body
LE: loop exit
PB: predicated region body
PF: predicated region fallthrough
CT: control target
= control target key end

     0   :  { %vm30_vm0 = vcmask 130048   ;;  %v133_v3 = vmov 0   ;;  %s183_s0 = inlined_call_operand.vmem [shape: f32[8,16], index: 0, kind: input, shape index: {}]   ;;  %s184_s1 = inlined_call_operand.vmem [shape: f32[1,16], index: 1, kind: input, shape index: {}]   ;;  %s185_s2 = inlined_call_operand.vmem [shape: s32[8,1], index: 2, kind: input, shape index: {}]   ;;  %s186_s3 = inlined_call_operand.hbm [shape: f32[1,1], index: 3, kind: output, shape index: {}]  }
   0x1   :  { %v21_v0 = vld [vmem:[%s183_s0] sm:$0xff]  ;;  %104 = vset.pattern.permute.xlu0 %v133_v3 }
   0x2   :  { %v98_v1 = vld [vmem:[%s184_s1] ss:$0 sm:$0xff] }
   0x3   :  { %v29_v2 = vadd.f32 %v98_v1, %v21_v0 }
   0x4   :  { %8 = vsyncpa [#allocation4], 0  ;;  %v45_v5 = vld [vmem:[%s185_s2] sm:$0xff]  ;;  %v43_v9 = vlaneseq  ;;  %vm63_vm2 = vcmask 7168   ;;  %vm19_vm3 = vcmask 0   ;;  %v134_v23 = vmov 0.0  }
   0x5   :  { %v31_v4 = vsel %vm30_vm0, %v29_v2, -inf  ;;  %20 = vst.msk [vmem:[#allocation2] sm:$0x1] %vm19_vm3, %v134_v23  ;;  %s135_s1 = smov [#allocation3]  }
   0x6   :  { %32 = vmax.xlane.f32.xlu0 %v31_v4  ;;  %v44_v10 = vand.u32 127, %v43_v9  ;;  %s90_s2 = sshll.u32 %s135_s1, 4  ;;  %s91_s2 = int_to_ptr.vmem [resolvable:$true] %s90_s2 }
   0x7   :  { %s109_s18 = scalar_lea.vmem %s91_s2, 16  ;;  %s113_s19 = scalar_lea.vmem %s91_s2, 32 }
   0x8   :  { %p110_p0 = scmp.ne.s32.totalorder %s91_s2, %s109_s18  ;;  %p114_p1 = scmp.lt.s32.totalorder %s91_s2, %s91_s2 }
   0x9   :  { %p115_p2 = scmp.lt.s32.totalorder %s113_s19, %s109_s18 }
   0xb   :  { %p116_p3 = por %p115_p2, %p114_p1 }
   0xc   :  { %v62_v31 = vld [vmem:[#allocation2] sm:$0x1] }
   0xd   :  { %p117_p4 = pnand %p116_p3, %p110_p0 }
  0x1c   :  { %47 = vperm.xlu0 %104, %v45_v5  }
  0x93   :  { %v33_v6 = vpop.xlane.xlu0 %32 }
  0x94   :  { %v34_v7 = vsub.f32 %v29_v2, %v33_v6 }
  0x96   :  { %v35_v8 = vmul.f32 1.442695, %v34_v7 }
  0x98   :  { %105 = vpow2.f32 %v35_v8 }
  0x9b   :  { %v48_v11 = vpop.permute.xlu0 %47 }
  0x9c   :  { %vm49_vm1 = vcmp.eq.s32.totalorder %v44_v10, %v48_v11 }
  0x9d   :  { %v50_v13 = vsel %vm49_vm1, %v29_v2, 0.0 }
  0x9e   :  { %v51_v15 = vsel %vm30_vm0, %v50_v13, 0.0 }
  0xa2   :  { %v106_v12 = vpop.eup %105 }
  0xa3   :  { %v37_v14 = vsel %vm30_vm0, %v106_v12, 0.0 }
  0xa4   :  { %38 = vadd.xlane.f32.xlu1 %v37_v14 }
  0xa8   :  { %52 = vadd.xlane.f32.xlu1 %v51_v15 }
 0x131   :  { %v39_v16 = vpop.xlane.xlu1 %38 }
 0x132   :  { %107 = vlog2.f32 %v39_v16 }
 0x135   :  { %v53_v19 = vpop.xlane.xlu1 %52 }
 0x13c   :  { %v108_v17 = vpop.eup %107 }
 0x13d   :  { %v41_v18 = vmul.f32 0.6931472, %v108_v17 }
 0x13f   :  { %v42_v20 = vadd.f32 %v41_v18, %v33_v6 }
 0x141   :  { %v60_v21 = vsub.f32 %v42_v20, %v53_v19 }
 0x143   :  { %v64_v22 = vsel %vm63_vm2, %v60_v21, 0.0 }
 0x144   :  { %65 = vadd.xlane.f32.xlu1 %v64_v22 }
 0x1d1   :  { %v66_v24 = vpop.xlane.xlu1 %65 }
 0x1d2   :  { %v67_v25 = vrot.slane %v66_v24, 4 }
 0x1d4   :  { %v68_v26 = vadd.f32 %v67_v25, %v66_v24 }
 0x1d6   :  { %v69_v27 = vrot.slane %v68_v26, 2 }
 0x1d8   :  { %v70_v28 = vadd.f32 %v69_v27, %v68_v26 }
 0x1da   :  { %v71_v29 = vrot.slane %v70_v28, 1 }
 0x1dc   :  { %v72_v30 = vadd.f32 %v71_v29, %v70_v28 }
 0x1de   :  { %99 = vpush %v72_v30 }
 0x20f   :  { %s100_s0 = spop %99 }
 0x210   :  { %v74_v32 = vstv %s100_s0 }
 0x211   :  { %v75_v33 = vadd.f32 %v74_v32, %v62_v31 }
 0x213   :  { %77 = vst.msk [vmem:[#allocation2] sm:$0x1] %vm19_vm3, %v75_v33 }
 0x21a   :  { %v81_v34 = vld [vmem:[#allocation2] sm:$0x1] }
 0x21b   :  { %v82_v35 = vmul.f32 0.125, %v81_v34 }
 0x21d   :  { %83 = vst.msk [vmem:[#allocation3] sm:$0x1] %vm19_vm3, %v82_v35 }
 0x21e   :  { %120 = shalt.err (!%p117_p4)
}
 0x21f   :  { %s121_s22 = scalar_lea.hbm %s186_s3, 16 }
 0x220   :  { %p122_p5 = scmp.ne.s32.totalorder %s186_s3, %s121_s22  ;;  %p125_p6 = scmp.lt.u32.totalorder %s121_s22, %s186_s3 }
 0x222   :  { %p127_p7 = pnand %p125_p6, %p122_p5 }
 0x224   :  { %130 = shalt.err (!%p127_p7)
}
 0x225   :  { %93 = dma.vmem_to_hbm [thread:$0]  %s91_s2, 16, %s186_s3, [#allocation4]  }
 0x226   :  { %131 = dma.done.wait [#allocation4], 16  }
 0x227   :  { %132 = vsyncadd [#allocation4], 4294967280 }
 0x228   :  { %97 = vsyncpa [#allocation4], 1 }

</bundles_post_ra>
